<compile_context>
chip_gen: v7x
topology: tpu7x:2x2x1
jax: 0.10.0
libtpu: 0.0.40
codegen_flags: <defaults>
</compile_context>

<pallas_src>
import functools

import jax
import jax.numpy as jnp
from jax.experimental import pallas as pl
from jax.experimental.pallas import tpu as pltpu

SUBLANE = 8


def _round_up(n, m):
    return ((n + m - 1) // m) * m


# ---------------------------------------------------------------------------
# Pallas kernel: fused N-layer dense(+ReLU) stack. Intermediate activations
# never leave VMEM/vregs; only the final (bt, d_out) tile is written back.
# ---------------------------------------------------------------------------
def _fused_mlp_kernel(*refs, n_layers, relu_flags, compute_dtype):
    x_ref = refs[0]
    w_refs = refs[1:1 + n_layers]
    b_refs = refs[1 + n_layers:1 + 2 * n_layers]
    o_ref = refs[1 + 2 * n_layers]

    h = x_ref[...].astype(jnp.float32)
    for layer in range(n_layers):
        # MXU matmul on (bf16) operands, f32 accumulate; bias/ReLU in f32 (VPU).
        h = jnp.dot(h.astype(compute_dtype), w_refs[layer][...],
                    preferred_element_type=jnp.float32) + b_refs[layer][...]
        if relu_flags[layer]:
            h = jnp.maximum(h, 0.0)
    o_ref[...] = h.astype(o_ref.dtype)


def make_fused_dense_stack(weights, biases, relu_flags, *,
                           batch_tile=2048, compute_dtype=jnp.bfloat16):
    """Build a jit-wrapped callable running the whole dense stack as one Pallas call.

    Weights keep their true shapes (no 128x128 zero padding); matmul operands
    are cast to `compute_dtype` (bf16 by default) while accumulation, bias add
    and ReLU stay in float32.
    """
    n_layers = len(weights)
    d_in = weights[0].shape[0]
    d_out = weights[-1].shape[1]

    w_params = tuple(jnp.asarray(w).astype(compute_dtype) for w in weights)
    b_params = tuple(jnp.asarray(b).reshape(1, -1).astype(jnp.float32)
                     for b in biases)
    relu_flags = tuple(bool(f) for f in relu_flags)

    kernel = functools.partial(_fused_mlp_kernel, n_layers=n_layers,
                               relu_flags=relu_flags,
                               compute_dtype=compute_dtype)

    # Defensive: batch tile must be sublane-aligned for the grid path.
    batch_tile = _round_up(max(int(batch_tile), SUBLANE), SUBLANE)
    # TODO(synk): when tuning batch_tile above ~4096 on v7x, set
    # pltpu.CompilerParams(vmem_limit_bytes=...) to respect its 32 MiB scoped VMEM.

    flops_per_row = 2 * sum(w.shape[0] * w.shape[1] for w in weights)
    param_bytes = (sum(int(w.size) * w.dtype.itemsize for w in w_params)
                   + sum(int(b.size) * b.dtype.itemsize for b in b_params))

    def apply(x, *unused_args, **unused_kwargs):
        x = x.astype(jnp.float32)
        batch = x.shape[0]
        bt = min(batch_tile, _round_up(batch, SUBLANE))
        pb = _round_up(batch, bt)
        num_tiles = pb // bt

        cost = pl.CostEstimate(
            flops=flops_per_row * pb,
            transcendentals=0,
            bytes_accessed=pb * d_in * 4 + pb * d_out * 4 + param_bytes)

        if num_tiles == 1:
            # Single block: whole arrays are one VMEM-resident tile each
            # (block == full array dims, always legal); no padding, no grid.
            return pl.pallas_call(
                kernel,
                out_shape=jax.ShapeDtypeStruct((batch, d_out), jnp.float32),
                cost_estimate=cost,
            )(x, *w_params, *b_params)

        # Batch grid: activation tiles double-buffered, params resident
        # (constant block index); batch axis "parallel" -> both TCs on v7x.
        x_pad = jnp.pad(x, ((0, pb - batch), (0, 0)))
        in_specs = [pl.BlockSpec((bt, d_in), lambda i: (i, 0))]
        in_specs += [pl.BlockSpec(w.shape, lambda i: (0, 0)) for w in w_params]
        in_specs += [pl.BlockSpec(b.shape, lambda i: (0, 0)) for b in b_params]
        out_pad = pl.pallas_call(
            kernel,
            out_shape=jax.ShapeDtypeStruct((pb, d_out), jnp.float32),
            grid=(num_tiles,),
            in_specs=in_specs,
            out_specs=pl.BlockSpec((bt, d_out), lambda i: (i, 0)),
            compiler_params=pltpu.CompilerParams(
                dimension_semantics=("parallel",)),
            cost_estimate=cost,
        )(x_pad, *w_params, *b_params)
        return out_pad[:batch]

    # jit fuses the surrounding cast/pad/slice data movement with the call.
    return jax.jit(apply)


# ---------------------------------------------------------------------------
# ConfigurableModel equivalent: a list of callables applied sequentially.
# Step management is host-side Python, exactly mirroring the PyTorch class;
# the fused Pallas kernel is registered as a single step.
# ---------------------------------------------------------------------------
class ConfigurableModelPallas:
    """JAX/Pallas mirror of kaira ConfigurableModel."""

    def __init__(self):
        self.steps = []

    def add_step(self, step):
        if not callable(step):
            raise TypeError("Step must be callable")
        self.steps.append(step)
        return self

    def remove_step(self, index):
        if not 0 <= index < len(self.steps):
            raise IndexError(
                f"Step index {index} out of range (0-{len(self.steps) - 1})")
        self.steps.pop(index)
        return self

    def forward(self, input_data, *args, **kwargs):
        result = input_data
        for step in self.steps:                       # sequential pipeline
            result = step(result, *args, **kwargs)
        return result

    __call__ = forward


def _init_linear(key, d_in, d_out):
    kw, kb = jax.random.split(key)
    bound = 1.0 / (d_in ** 0.5)
    w = jax.random.uniform(kw, (d_in, d_out), jnp.float32, -bound, bound)
    b = jax.random.uniform(kb, (1, d_out), jnp.float32, -bound, bound)
    return w, b


def _ref_stack(x, weights, biases, relu_flags, compute_dtype):
    """Pure-JAX reference with the same bf16-operand / f32-accumulate semantics."""
    h = x.astype(jnp.float32)
    for w, b, relu in zip(weights, biases, relu_flags):
        h = jnp.dot(h.astype(compute_dtype), w.astype(compute_dtype),
                    preferred_element_type=jnp.float32) + b.reshape(1, -1)
        if relu:
            h = jnp.maximum(h, 0.0)
    return h


if __name__ == "__main__":
    key = jax.random.PRNGKey(0)
    k_x, k0, k1, k2 = jax.random.split(key, 4)

    batch, d_in, d_hidden, d_out = 8, 32, 64, 32
    x = jax.random.normal(k_x, (batch, d_in), jnp.float32)

    w0, b0 = _init_linear(k0, d_in, d_hidden)
    w1, b1 = _init_linear(k1, d_hidden, d_hidden)
    w2, b2 = _init_linear(k2, d_hidden, d_out)

    weights = [w0, w1, w2]
    biases = [b0, b1, b2]
    relu_flags = [True, True, False]

    # One fused Pallas step implements the whole 3-layer dense pipeline.
    fused_stack = make_fused_dense_stack(weights, biases, relu_flags)

    model = ConfigurableModelPallas()
    model.add_step(fused_stack)

    out = model(x)
    out = jax.block_until_ready(out)
    assert out.shape == (batch, d_out)

    # Matched-semantics reference (same bf16 matmul operands, f32 accumulate).
    ref_matched = _ref_stack(x, weights, biases, relu_flags, jnp.bfloat16)
    assert jnp.allclose(out, ref_matched, atol=1e-4, rtol=1e-4)

    # Loose check against the full-f32 reference (bf16 operand rounding only).
    ref_f32 = _ref_stack(x, weights, biases, relu_flags, jnp.float32)
    assert jnp.allclose(out, ref_f32, atol=5e-2, rtol=5e-2)

    print("KERNEL_OK")
</pallas_src>

<mosaic_0001>
module attributes {stable_mosaic.version = 11 : i64} {
  func.func @_fused_mlp_kernel(%arg0: memref<8x32xf32, #tpu.memory_space<vmem>>, %arg1: memref<32x64xbf16, #tpu.memory_space<vmem>>, %arg2: memref<64x64xbf16, #tpu.memory_space<vmem>>, %arg3: memref<64x32xbf16, #tpu.memory_space<vmem>>, %arg4: memref<1x64xf32, #tpu.memory_space<vmem>>, %arg5: memref<1x64xf32, #tpu.memory_space<vmem>>, %arg6: memref<1x32xf32, #tpu.memory_space<vmem>>, %arg7: memref<8x32xf32, #tpu.memory_space<vmem>>) attributes {dimension_semantics = [], scalar_prefetch = 0 : i64, scratch_operands = 0 : i64, tpu.core_type = #tpu.core_type<tc>} {
    %c0 = arith.constant 0 : index
    %c0_0 = arith.constant 0 : index
    %0 = vector.load %arg0[%c0, %c0_0] : memref<8x32xf32, #tpu.memory_space<vmem>>, vector<8x32xf32>
    %1 = arith.truncf %0 : vector<8x32xf32> to vector<8x32xbf16>
    %c0_1 = arith.constant 0 : index
    %c0_2 = arith.constant 0 : index
    %2 = vector.load %arg1[%c0_1, %c0_2] : memref<32x64xbf16, #tpu.memory_space<vmem>>, vector<32x64xbf16>
    %cst = arith.constant dense<0.000000e+00> : vector<8x64xf32>
    %3 = tpu.matmul %1, %2, %cst {dimension_numbers = #tpu.dot_dimension_numbers<[1], [0], [0], [1], [0, 0, 1, 1], [], []>} : vector<8x32xbf16>, vector<32x64xbf16>, vector<8x64xf32> -> vector<8x64xf32>
    %c0_3 = arith.constant 0 : index
    %c0_4 = arith.constant 0 : index
    %4 = vector.load %arg4[%c0_3, %c0_4] : memref<1x64xf32, #tpu.memory_space<vmem>>, vector<1x64xf32>
    %5 = vector.broadcast %4 : vector<1x64xf32> to vector<8x64xf32>
    %6 = arith.addf %3, %5 : vector<8x64xf32>
    %cst_5 = arith.constant 0.000000e+00 : f32
    %7 = vector.broadcast %cst_5 : f32 to vector<8x64xf32>
    %8 = arith.maximumf %6, %7 : vector<8x64xf32>
    %9 = arith.truncf %8 : vector<8x64xf32> to vector<8x64xbf16>
    %c0_6 = arith.constant 0 : index
    %c0_7 = arith.constant 0 : index
    %10 = vector.load %arg2[%c0_6, %c0_7] : memref<64x64xbf16, #tpu.memory_space<vmem>>, vector<64x64xbf16>
    %cst_8 = arith.constant dense<0.000000e+00> : vector<8x64xf32>
    %11 = tpu.matmul %9, %10, %cst_8 {dimension_numbers = #tpu.dot_dimension_numbers<[1], [0], [0], [1], [0, 0, 1, 1], [], []>} : vector<8x64xbf16>, vector<64x64xbf16>, vector<8x64xf32> -> vector<8x64xf32>
    %c0_9 = arith.constant 0 : index
    %c0_10 = arith.constant 0 : index
    %12 = vector.load %arg5[%c0_9, %c0_10] : memref<1x64xf32, #tpu.memory_space<vmem>>, vector<1x64xf32>
    %13 = vector.broadcast %12 : vector<1x64xf32> to vector<8x64xf32>
    %14 = arith.addf %11, %13 : vector<8x64xf32>
    %cst_11 = arith.constant 0.000000e+00 : f32
    %15 = vector.broadcast %cst_11 : f32 to vector<8x64xf32>
    %16 = arith.maximumf %14, %15 : vector<8x64xf32>
    %17 = arith.truncf %16 : vector<8x64xf32> to vector<8x64xbf16>
    %c0_12 = arith.constant 0 : index
    %c0_13 = arith.constant 0 : index
    %18 = vector.load %arg3[%c0_12, %c0_13] : memref<64x32xbf16, #tpu.memory_space<vmem>>, vector<64x32xbf16>
    %cst_14 = arith.constant dense<0.000000e+00> : vector<8x32xf32>
    %19 = tpu.matmul %17, %18, %cst_14 {dimension_numbers = #tpu.dot_dimension_numbers<[1], [0], [0], [1], [0, 0, 1, 1], [], []>} : vector<8x64xbf16>, vector<64x32xbf16>, vector<8x32xf32> -> vector<8x32xf32>
    %c0_15 = arith.constant 0 : index
    %c0_16 = arith.constant 0 : index
    %20 = vector.load %arg6[%c0_15, %c0_16] : memref<1x32xf32, #tpu.memory_space<vmem>>, vector<1x32xf32>
    %21 = vector.broadcast %20 : vector<1x32xf32> to vector<8x32xf32>
    %22 = arith.addf %19, %21 : vector<8x32xf32>
    %c0_17 = arith.constant 0 : index
    %c0_18 = arith.constant 0 : index
    %23 = vector.load %arg7[%c0_17, %c0_18] : memref<8x32xf32, #tpu.memory_space<vmem>>, vector<8x32xf32>
    tpu.vector_store %arg7[%c0_17, %c0_18], %22 {strides = array<i32>} : memref<8x32xf32, #tpu.memory_space<vmem>>, vector<8x32xf32>,
    return
  }
}

</mosaic_0001>

<bundles_post_ra>
// kernel: apply.1
= control target key start
LH: loop header
LB: loop body
LE: loop exit
PB: predicated region body
PF: predicated region fallthrough
CT: control target
= control target key end

     0   :  { %12 = vsyncpa [#allocation3], 0  ;;  %s673_s0 = inlined_call_operand.hbm [shape: f32[8,32], index: 0, kind: input, shape index: {}]   ;;  %s674_s1 = inlined_call_operand.hbm [shape: bf16[32,64], index: 1, kind: input, shape index: {}]   ;;  %s675_s2 = inlined_call_operand.hbm [shape: bf16[64,64], index: 2, kind: input, shape index: {}]   ;;  %s676_s3 = inlined_call_operand.vmem [shape: bf16[64,32], index: 3, kind: input, shape index: {}]   ;;  %s677_s4 = inlined_call_operand.hbm [shape: f32[1,64], index: 4, kind: input, shape index: {}]   ;;  %s678_s5 = inlined_call_operand.vmem [shape: f32[1,64], index: 5, kind: input, shape index: {}]   ;;  %s679_s6 = inlined_call_operand.vmem [shape: f32[1,32], index: 6, kind: input, shape index: {}]   ;;  %s680_s7 = inlined_call_operand.hbm [shape: f32[8,32], index: 7, kind: output, shape index: {}]  }
   0x1   :  { %13 = vsyncpa [#allocation6], 0 }
   0x2   :  { %14 = vsyncpa [#allocation9], 0 }
   0x3   :  { %15 = vsyncpa [#allocation4], 0  ;;  %s533_s24 = smov [#allocation5]   ;;  %s415_s28 = scalar_lea.hbm %s674_s1, 256 }
   0x4   :  { %s31_s25 = sshll.u32 %s533_s24, 4  ;;  %p416_p0 = scmp.ne.s32.totalorder %s674_s1, %s415_s28  ;;  %s32_s25 = int_to_ptr.vmem [resolvable:$true] %s31_s25 }
   0x5   :  { %p419_p1 = scmp.lt.u32.totalorder %s415_s28, %s674_s1 }
   0x7   :  { %p421_p2 = pnand %p419_p1, %p416_p0 }
   0x9   :  { %424 = shalt.err (!%p421_p2)
}
   0xa   :  { %s425_s10 = scalar_lea.vmem %s32_s25, 256  ;;  %p430_p4 = scmp.lt.s32.totalorder %s32_s25, %s32_s25 }
   0xb   :  { %p426_p3 = scmp.ne.s32.totalorder %s32_s25, %s425_s10  ;;  %p431_p5 = scmp.lt.s32.totalorder %s425_s10, %s425_s10 }
   0xd   :  { %p432_p6 = por %p431_p5, %p430_p4 }
   0xf   :  { %p433_p7 = pnand %p432_p6, %p426_p3 }
  0x11   :  { %436 = shalt.err (!%p433_p7)
}
  0x12   :  { %s534_s11 = smov 64   ;;  %s535_s12 = smov 4  }
  0x13   :  { %37 = dma.hbm_to_vmem [thread:$0]  %s674_s1, 256, %s32_s25, [#allocation6], %s534_s11, %s534_s11, %s535_s12  }
  0x14   :  { %s536_s15 = smov [#allocation2]   ;;  %s537_s17 = smov [#allocation7]  }
  0x15   :  { %s22_s16 = sshll.u32 %s536_s15, 4  ;;  %s43_s18 = sshll.u32 %s537_s17, 4  ;;  %s23_s16 = int_to_ptr.vmem [resolvable:$true] %s22_s16  ;;  %s44_s18 = int_to_ptr.vmem [resolvable:$true] %s43_s18 }
  0x16   :  { %s437_s21 = scalar_lea.hbm %s673_s0, 128 }
  0x17   :  { %p438_p8 = scmp.ne.s32.totalorder %s673_s0, %s437_s21  ;;  %p441_p9 = scmp.lt.u32.totalorder %s437_s21, %s673_s0 }
  0x19   :  { %p443_p10 = pnand %p441_p9, %p438_p8 }
  0x1b   :  { %446 = shalt.err (!%p443_p10)
}
  0x1c   :  { %s447_s1 = scalar_lea.vmem %s23_s16, 128  ;;  %p452_p12 = scmp.lt.s32.totalorder %s23_s16, %s23_s16 }
  0x1d   :  { %p448_p11 = scmp.ne.s32.totalorder %s23_s16, %s447_s1  ;;  %p453_p13 = scmp.lt.s32.totalorder %s447_s1, %s447_s1 }
  0x1f   :  { %p454_p0 = por %p453_p13, %p452_p12 }
  0x21   :  { %p455_p1 = pnand %p454_p0, %p448_p11 }
  0x23   :  { %458 = shalt.err (!%p455_p1)
}
  0x24   :  { %25 = dma.hbm_to_vmem [thread:$0]  %s673_s0, 128, %s23_s16, [#allocation3]  }
  0x25   :  { %s459_s30 = scalar_lea.hbm %s675_s2, 512 }
  0x26   :  { %p460_p2 = scmp.ne.s32.totalorder %s675_s2, %s459_s30  ;;  %p463_p3 = scmp.lt.u32.totalorder %s459_s30, %s675_s2 }
  0x28   :  { %p465_p4 = pnand %p463_p3, %p460_p2 }
  0x2a   :  { %468 = shalt.err (!%p465_p4)
}
  0x2b   :  { %s469_s14 = scalar_lea.vmem %s44_s18, 512  ;;  %p474_p6 = scmp.lt.s32.totalorder %s44_s18, %s44_s18 }
  0x2c   :  { %p470_p5 = scmp.ne.s32.totalorder %s44_s18, %s469_s14  ;;  %p475_p7 = scmp.lt.s32.totalorder %s469_s14, %s469_s14 }
  0x2e   :  { %p476_p8 = por %p475_p7, %p474_p6 }
  0x30   :  { %p477_p9 = pnand %p476_p8, %p470_p5 }
  0x32   :  { %480 = shalt.err (!%p477_p9)
}
  0x33   :  { %49 = dma.hbm_to_vmem [thread:$0]  %s675_s2, 512, %s44_s18, [#allocation6], %s534_s11, %s534_s11, %s535_s12  }
  0x34   :  { %s538_s16 = smov [#allocation8]   ;;  %s481_s21 = scalar_lea.hbm %s677_s4, 16 }
  0x35   :  { %s58_s17 = sshll.u32 %s538_s16, 4  ;;  %p482_p10 = scmp.ne.s32.totalorder %s677_s4, %s481_s21  ;;  %s59_s17 = int_to_ptr.vmem [resolvable:$true] %s58_s17 }
  0x36   :  { %p485_p11 = scmp.lt.u32.totalorder %s481_s21, %s677_s4 }
  0x38   :  { %p487_p12 = pnand %p485_p11, %p482_p10 }
  0x3a   :  { %490 = shalt.err (!%p487_p12)
}
  0x3b   :  { %s491_s1 = scalar_lea.vmem %s59_s17, 16  ;;  %s495_s2 = scalar_lea.vmem %s59_s17, 32 }
  0x3c   :  { %p492_p13 = scmp.ne.s32.totalorder %s59_s17, %s491_s1  ;;  %p496_p0 = scmp.lt.s32.totalorder %s59_s17, %s59_s17 }
  0x3d   :  { %p497_p1 = scmp.lt.s32.totalorder %s495_s2, %s491_s1 }
  0x3f   :  { %p498_p2 = por %p497_p1, %p496_p0 }
  0x41   :  { %p499_p3 = pnand %p498_p2, %p492_p13 }
  0x43   :  { %502 = shalt.err (!%p499_p3)
}
  0x44   :  { %61 = dma.hbm_to_vmem [thread:$0]  %s677_s4, 16, %s59_s17, [#allocation9]  }
  0x45   :  { %525 = dma.done.wait [#allocation3], 128  }
  0x46   :  { %526 = vsyncadd [#allocation3], 4294967168 }
  0x47   :  { %527 = dma.done.wait [#allocation6], 768  }
  0x48   :  { %528 = vsyncadd [#allocation6], 4294966528 }
  0x49   :  { %529 = dma.done.wait [#allocation9], 16  }
  0x4a   :  { %530 = vsyncadd [#allocation9], 4294967280  ;;  %v539_v0 = vmov 0.0   ;;  %vm540_vm0 = vmmov 0   ;;  %v405_v1 = vld [vmem:[#allocation5] sm:$0xff]   ;;  %v406_v2 = vld [vmem:[#allocation5 + $0x8] sm:$0xff]  }
  0x4b   :  { %364 = vmatprep.subr.bf16.mxu0 %v539_v0  ;;  %368 = vmatprep.mubr.msk.bf16.mxu0 %vm540_vm0, %v539_v0  ;;  %v79_v3 = vld [vmem:[#allocation2] sm:$0xff]  ;;  %v407_v4 = vld [vmem:[#allocation7] sm:$0xff]   ;;  %vm104_vm1 = vcmask 261120   ;;  %v409_v7 = vld [vmem:[#allocation7 + $0x10] sm:$0xff]   ;;  %vm189_vm2 = vcmask 523264   ;;  %s541_s0 = smov [#allocation10]  }
  0x4c   :  { %372 = vmatprep.subr.bf16.mxu1 %v539_v0  ;;  %380 = vmatprep.mubr.msk.bf16.mxu1 %vm540_vm0, %v539_v0  ;;  %v408_v5 = vld [vmem:[#allocation7 + $0x8] sm:$0xff]   ;;  %v80_v6 = vpack.c.bf16 %v79_v3, %v79_v3  ;;  %v410_v8 = vld [vmem:[#allocation7 + $0x18] sm:$0xff]   ;;  %v412_v10 = vld [vmem:[%s676_s3 + $0x8] sm:$0xff]  }
  0x4d   :  { %365 = vmatpush3.bf16.msra.mxu0 %v405_v1  ;;  %373 = vmatpush3.bf16.msra.mxu1 %v407_v4  ;;  %v411_v9 = vld [vmem:[%s676_s3] sm:$0xff]   ;;  %v335_v11 = vld [vmem:[#allocation8] ss:$0 sm:$0xff]  ;;  %v413_v19 = vld [vmem:[%s676_s3 + $0x10] sm:$0xff]  }
  0x4e   :  { %366 = vmatprep.subr.bf16.mxu0 %v539_v0  ;;  %374 = vmatprep.subr.bf16.mxu1 %v539_v0  ;;  %v414_v20 = vld [vmem:[%s676_s3 + $0x18] sm:$0xff]   ;;  %v339_v21 = vld [vmem:[%s678_s5] ss:$0 sm:$0xff]  ;;  %s324_s3 = sshll.u32 %s541_s0, 4  ;;  %s325_s3 = int_to_ptr.vmem [resolvable:$true] %s324_s3 }
  0x4f   :  { %v345_v29 = vld [vmem:[%s679_s6] ss:$0 sm:$0xff]  ;;  %s503_s5 = scalar_lea.vmem %s325_s3, 128  ;;  %p508_p5 = scmp.lt.s32.totalorder %s325_s3, %s325_s3 }
  0x50   :  { %p504_p4 = scmp.ne.s32.totalorder %s325_s3, %s503_s5  ;;  %p509_p6 = scmp.lt.s32.totalorder %s503_s5, %s503_s5 }
  0x51   :  { %367 = vmatpush3.bf16.msra.mxu0 %v406_v2  ;;  %375 = vmatpush3.bf16.msra.mxu1 %v408_v5 }
  0x52   :  { %384 = vmatprep.subr.bf16.mxu0 %v539_v0  ;;  %376 = vmatprep.subr.bf16.mxu1 %v539_v0  ;;  %p510_p7 = por %p509_p6, %p508_p5 }
  0x54   :  { %369 = vmatmul.mubr.msk.bf16.vlgmr.msra.gmra.mrb[0].mxu0 %vm104_vm1, %v80_v6  ;;  %p511_p8 = pnand %p510_p7, %p504_p4 }
  0x55   :  { %392 = vmatprep.mubr.msk.bf16.mxu0 %vm540_vm0, %v539_v0  ;;  %377 = vmatpush3.bf16.msra.mxu1 %v409_v7 }
  0x56   :  { %378 = vmatprep.subr.bf16.mxu1 %v539_v0  ;;  %385 = vmatpush3.bf16.msra.mxu0 %v411_v9 }
  0x57   :  { %386 = vmatprep.subr.bf16.mxu0 %v539_v0 }
  0x59   :  { %379 = vmatpush3.bf16.msra.mxu1 %v410_v8 }
  0x5a   :  { %387 = vmatpush3.bf16.msra.mxu0 %v412_v10 }
  0x5b   :  { %388 = vmatprep.subr.bf16.mxu0 %v539_v0 }
  0x5e   :  { %389 = vmatpush3.bf16.msra.mxu0 %v413_v19 }
  0x5f   :  { %390 = vmatprep.subr.bf16.mxu0 %v539_v0 }
  0x62   :  { %391 = vmatpush3.bf16.msra.mxu0 %v414_v20 }
 0x127   :  { %v142_v12 = vpop.f32.mrb[0].mxu0 }
 0x128   :  { %v143_v13 = vadd.f32 %v335_v11, %v142_v12  ;;  %v370_v14 = vpop.f32.mrb[1].mxu0 }
 0x129   :  { %v145_v15 = vpop.f32.mrb[2].mxu0 }
 0x12a   :  { %v148_v16 = vmax.f32 %v143_v13, 0.0  ;;  %v371_v17 = vpop.f32.mrb[3].mxu0 }
 0x12c   :  { %v149_v18 = vpack.c.bf16 %v148_v16, %v148_v16 }
 0x12e   :  { %381 = vmatmul.mubr.msk.bf16.vlgmr.msra.gmra.mrb[0].mxu1 %vm189_vm2, %v149_v18 }
 0x201   :  { %v227_v22 = vpop.f32.mrb[0].mxu1 }
 0x202   :  { %v228_v23 = vadd.f32 %v339_v21, %v227_v22  ;;  %v382_v24 = vpop.f32.mrb[1].mxu1 }
 0x203   :  { %v230_v25 = vpop.f32.mrb[2].mxu1 }
 0x204   :  { %v233_v26 = vmax.f32 %v228_v23, 0.0  ;;  %v383_v27 = vpop.f32.mrb[3].mxu1 }
 0x206   :  { %v234_v28 = vpack.c.bf16 %v233_v26, %v233_v26 }
 0x208   :  { %393 = vmatmul.mubr.msk.bf16.vlgmr.msra.gmra.mrb[4].mxu0 %vm189_vm2, %v234_v28 }
 0x2db   :  { %v311_v30 = vpop.f32.mrb[4].mxu0 }
 0x2dc   :  { %v312_v31 = vadd.f32 %v345_v29, %v311_v30  ;;  %v394_v32 = vpop.f32.mrb[5].mxu0 }
 0x2dd   :  { %v314_v33 = vpop.f32.mrb[6].mxu0 }
 0x2de   :  { %317 = vst.msk [vmem:[#allocation10] sm:$0xff] %vm104_vm1, %v312_v31  ;;  %v395_v34 = vpop.f32.mrb[7].mxu0 }
 0x2df   :  { %514 = shalt.err (!%p511_p8)
}
 0x2e0   :  { %s515_s6 = scalar_lea.hbm %s680_s7, 128 }
 0x2e1   :  { %p516_p9 = scmp.ne.s32.totalorder %s680_s7, %s515_s6  ;;  %p519_p10 = scmp.lt.u32.totalorder %s515_s6, %s680_s7 }
 0x2e3   :  { %p521_p11 = pnand %p519_p10, %p516_p9 }
 0x2e5   :  { %524 = shalt.err (!%p521_p11)
}
 0x2e6   :  { %327 = dma.vmem_to_hbm [thread:$0]  %s325_s3, 128, %s680_s7, [#allocation4]  }
 0x2e7   :  { %531 = dma.done.wait [#allocation4], 128  }
 0x2e8   :  { %532 = vsyncadd [#allocation4], 4294967168 }
 0x2e9   :  { %331 = vsyncpa [#allocation3], 1 }
 0x2ea   :  { %332 = vsyncpa [#allocation6], 1 }
 0x2eb   :  { %333 = vsyncpa [#allocation9], 1 }
 0x2ec   :  { %334 = vsyncpa [#allocation4], 1 }

</bundles_post_ra>
